<compile_context>
chip_gen: v7x
topology: tpu7x:2x2x1
jax: 0.10.0
libtpu: 0.0.40
codegen_flags: <defaults>
</compile_context>

<pallas_src>
import jax
import jax.numpy as jnp
from jax import lax
from jax.experimental import pallas as pl
from jax.experimental.pallas import tpu as pltpu


def _round_up(x, m):
    return ((x + m - 1) // m) * m


def _kl_head_kernel(x_ref, w_ref, b_ref, o_ref):
    # x_ref: (TB, H) CLS embeddings (resident across the O-tile axis)
    # w_ref: (TO, H) projection-weight tile in torch (out, in) layout
    # b_ref: (1, TO) bias tile
    # o_ref: (TB, TO) output tile
    x = x_ref[...].astype(jnp.float32)

    # F.normalize(x, dim=-1, p=2): x / max(||x||_2, 1e-12).
    # rsqrt(max(sum_sq, 1e-24)) == 1 / max(||x||_2, 1e-12) -> one EUP op.
    sq_sum = jnp.sum(x * x, axis=-1, keepdims=True)
    x_n = x * lax.rsqrt(jnp.maximum(sq_sum, 1e-24))

    # Linear projection without materializing W^T: contract the H axis of both
    # operands. Keep W in its native dtype; cast x_n to match (f32 stays f32,
    # bf16 weights give a bf16-in / f32-accumulate MXU path).
    w = w_ref[...]
    y = lax.dot_general(
        x_n.astype(w.dtype), w,
        dimension_numbers=(((1,), (1,)), ((), ())),
        preferred_element_type=jnp.float32,
    )
    y = y + b_ref[...].astype(jnp.float32)
    o_ref[...] = y.astype(o_ref.dtype)


def _choose_tiles(B, H, O_pad, x_bytes, w_bytes, out_bytes):
    # Batch tile: full (padded) batch unless it's large.
    TB = 128 if B > 128 else _round_up(B, 8)
    # Output tile: biggest lane-dense tile whose double-buffered working set
    # stays under the default ~32 MiB scoped-VMEM budget (safe on v5e/v6e/v7x).
    budget = 28 * 1024 * 1024
    TO = 128
    for cand in (4096, 2048, 1024, 512, 256, 128):
        if O_pad % cand:
            continue
        need = 2 * cand * H * w_bytes                 # double-buffered W tiles
        need += 2 * TB * H * x_bytes                  # x tile
        need += 2 * TB * cand * max(out_bytes, 4)     # out tile (+ f32 temp)
        need += 2 * cand * 4                          # bias tile
        if need <= budget:
            TO = cand
            break
    return TB, TO


def kl_head_forward(last_hidden_state, weight, bias):
    """last_hidden_state: [B, S, H]; weight: [O, H] (torch layout); bias: [O]."""
    B, S, H = last_hidden_state.shape
    O = weight.shape[0]
    out_dtype = last_hidden_state.dtype

    # Glue: CLS-token slice (tiny B x H slab). The heavy tensor (W) is used in
    # its native (O, H) layout -- no transpose, no extra HBM round-trip.
    x_cls = last_hidden_state[:, 0, :]

    # Pad to lane/sublane-friendly shapes.
    O_pad = _round_up(O, 128)
    TB, TO = _choose_tiles(
        B, H, O_pad,
        x_cls.dtype.itemsize, weight.dtype.itemsize,
        jnp.dtype(out_dtype).itemsize)
    B_pad = _round_up(B, TB)

    if B_pad != B:
        x_cls = jnp.pad(x_cls, ((0, B_pad - B), (0, 0)))
    w = weight if O_pad == O else jnp.pad(weight, ((0, O_pad - O), (0, 0)))
    b = bias if O_pad == O else jnp.pad(bias, (0, O_pad - O))
    b2d = b.reshape(1, O_pad)

    grid = (B_pad // TB, O_pad // TO)

    out = pl.pallas_call(
        _kl_head_kernel,
        out_shape=jax.ShapeDtypeStruct((B_pad, O_pad), out_dtype),
        grid_spec=pltpu.PrefetchScalarGridSpec(
            num_scalar_prefetch=0,
            grid=grid,
            in_specs=[
                pl.BlockSpec((TB, H), lambda i, j: (i, 0)),   # x: resident over j
                pl.BlockSpec((TO, H), lambda i, j: (j, 0)),   # W: streamed over j
                pl.BlockSpec((1, TO), lambda i, j: (0, j)),   # bias tile
            ],
            out_specs=pl.BlockSpec((TB, TO), lambda i, j: (i, j)),
        ),
        compiler_params=pltpu.CompilerParams(
            # Both grid axes are independent -> shardable across v7x's 2 TCs.
            dimension_semantics=("parallel", "parallel")),
    )(x_cls, w, b2d)

    return out[:B, :O]


def _reference(last_hidden_state, weight, bias):
    x = last_hidden_state[:, 0, :].astype(jnp.float32)
    norm = jnp.sqrt(jnp.sum(x * x, axis=-1, keepdims=True))
    x_n = x / jnp.maximum(norm, 1e-12)
    return x_n @ weight.T.astype(jnp.float32) + bias.astype(jnp.float32)


if __name__ == "__main__":
    # Small shapes consistent with the module: batch=2, seq=8,
    # hidden(embeddings_dim)=32, output_dim=16.
    B, S, H, O = 2, 8, 32, 16
    key = jax.random.PRNGKey(0)
    k_x, k_w, k_b = jax.random.split(key, 3)

    last_hidden_state = jax.random.normal(k_x, (B, S, H), dtype=jnp.float32)

    # Deterministic nn.Linear-style init: U(-1/sqrt(in), 1/sqrt(in))
    bound = 1.0 / (H ** 0.5)
    weight = jax.random.uniform(k_w, (O, H), minval=-bound, maxval=bound,
                                dtype=jnp.float32)
    bias = jax.random.uniform(k_b, (O,), minval=-bound, maxval=bound,
                              dtype=jnp.float32)

    out = kl_head_forward(last_hidden_state, weight, bias)
    out = jax.block_until_ready(out)

    ref = _reference(last_hidden_state, weight, bias)
    assert out.shape == (B, O)
    assert jnp.allclose(out, ref, atol=1e-5, rtol=1e-5), "mismatch vs reference"

    print("KERNEL_OK")
</pallas_src>

<mosaic_0001>
module attributes {stable_mosaic.version = 11 : i64} {
  func.func @_kl_head_kernel(%arg0: i32, %arg1: i32, %arg2: memref<8x32xf32, #tpu.memory_space<vmem>>, %arg3: memref<128x32xf32, #tpu.memory_space<vmem>>, %arg4: memref<1x128xf32, #tpu.memory_space<vmem>>, %arg5: memref<8x128xf32, #tpu.memory_space<vmem>>) attributes {dimension_semantics = [#tpu.dimension_semantics<parallel>, #tpu.dimension_semantics<parallel>], iteration_bounds = array<i64: 1, 1>, scalar_prefetch = 0 : i64, scratch_operands = 0 : i64, tpu.core_type = #tpu.core_type<tc>, window_params = [{transform_indices = @transform_0, window_bounds = array<i64: 8, 32>}, {transform_indices = @transform_1, window_bounds = array<i64: 128, 32>}, {transform_indices = @transform_2, window_bounds = array<i64: 1, 128>}, {transform_indices = @transform_3, window_bounds = array<i64: 8, 128>}]} {
    %c0 = arith.constant 0 : index
    %c0_0 = arith.constant 0 : index
    %0 = vector.load %arg2[%c0, %c0_0] : memref<8x32xf32, #tpu.memory_space<vmem>>, vector<8x32xf32>
    %1 = arith.mulf %0, %0 : vector<8x32xf32>
    %cst = arith.constant dense<0.000000e+00> : vector<8xf32>
    %2 = vector.multi_reduction <add>, %1, %cst [1] : vector<8x32xf32> to vector<8xf32>
    %3 = vector.shape_cast %2 : vector<8xf32> to vector<8x1xf32>
    %cst_1 = arith.constant 1.000000e-24 : f32
    %4 = vector.broadcast %cst_1 : f32 to vector<8x1xf32>
    %5 = arith.maximumf %3, %4 : vector<8x1xf32>
    %6 = math.rsqrt %5 : vector<8x1xf32>
    %7 = vector.broadcast %6 : vector<8x1xf32> to vector<8x32xf32>
    %8 = arith.mulf %0, %7 : vector<8x32xf32>
    %c0_2 = arith.constant 0 : index
    %c0_3 = arith.constant 0 : index
    %9 = vector.load %arg3[%c0_2, %c0_3] : memref<128x32xf32, #tpu.memory_space<vmem>>, vector<128x32xf32>
    %cst_4 = arith.constant dense<0.000000e+00> : vector<8x128xf32>
    %10 = tpu.matmul %8, %9, %cst_4 {dimension_numbers = #tpu.dot_dimension_numbers<[1], [1], [0], [0], [0, 0, 1, 0], [], []>} : vector<8x32xf32>, vector<128x32xf32>, vector<8x128xf32> -> vector<8x128xf32>
    %c0_5 = arith.constant 0 : index
    %c0_6 = arith.constant 0 : index
    %11 = vector.load %arg4[%c0_5, %c0_6] : memref<1x128xf32, #tpu.memory_space<vmem>>, vector<1x128xf32>
    %12 = vector.broadcast %11 : vector<1x128xf32> to vector<8x128xf32>
    %13 = arith.addf %10, %12 : vector<8x128xf32>
    %c0_7 = arith.constant 0 : index
    %c0_8 = arith.constant 0 : index
    %14 = vector.load %arg5[%c0_7, %c0_8] : memref<8x128xf32, #tpu.memory_space<vmem>>, vector<8x128xf32>
    tpu.vector_store %arg5[%c0_7, %c0_8], %13 {strides = array<i32>} : memref<8x128xf32, #tpu.memory_space<vmem>>, vector<8x128xf32>,
    return
  }
  func.func @transform_0(%arg0: i32, %arg1: i32) -> (i32, i32) {
    %c0_i32 = arith.constant 0 : i32
    %c0_i32_0 = arith.constant 0 : i32
    return %arg0, %c0_i32 : i32, i32
  }
  func.func @transform_1(%arg0: i32, %arg1: i32) -> (i32, i32) {
    %c0_i32 = arith.constant 0 : i32
    %c0_i32_0 = arith.constant 0 : i32
    return %arg1, %c0_i32 : i32, i32
  }
  func.func @transform_2(%arg0: i32, %arg1: i32) -> (i32, i32) {
    %c0_i32 = arith.constant 0 : i32
    %c0_i32_0 = arith.constant 0 : i32
    return %c0_i32, %arg1 : i32, i32
  }
  func.func @transform_3(%arg0: i32, %arg1: i32) -> (i32, i32) {
    %c0_i32 = arith.constant 0 : i32
    return %arg0, %arg1 : i32, i32
  }
}

</mosaic_0001>

<bundles_post_ra>
// kernel: tpu_custom_call.1
= control target key start
LH: loop header
LB: loop body
LE: loop exit
PB: predicated region body
PF: predicated region fallthrough
CT: control target
= control target key end

     0   :  { %vm17_vm0 = vcmask 261120   ;;  %v315_v5 = vmov 0.0|0.0   ;;  %s429_s0 = inlined_call_operand.vmem [shape: f32[8,32], index: 0, kind: input, shape index: {}]   ;;  %s430_s1 = inlined_call_operand.vmem [shape: f32[128,32], index: 1, kind: input, shape index: {}]   ;;  %s431_s2 = inlined_call_operand.vmem [shape: f32[1,128], index: 2, kind: input, shape index: {}]   ;;  %s432_s3 = inlined_call_operand.hbm [shape: f32[8,128], index: 3, kind: output, shape index: {}]  }
   0x1   :  { %v15_v0 = vld [vmem:[%s429_s0] sm:$0xff]  ;;  %v25_v2 = vld [vmem:[%s430_s1 + $0x8] sm:$0xff]  ;;  %vm350_vm1 = vmpackc.low %vm17_vm0, %vm17_vm0  ;;  %253 = vmatprep.subr.bf16.mxu0 %v315_v5 }
   0x2   :  { %v24_v1 = vld [vmem:[%s430_s1] sm:$0xff]  ;;  %v16_v3 = vmul.f32 %v15_v0, %v15_v0  ;;  %v26_v8 = vld [vmem:[%s430_s1 + $0x10] sm:$0xff]  ;;  %v27_v9 = vld [vmem:[%s430_s1 + $0x18] sm:$0xff] }
   0x3   :  { %v254_v6 = vpack.c.bf16 %v25_v2, %v24_v1 }
   0x4   :  { %v18_v7 = vsel %vm17_vm0, %v16_v3, 0.0 }
   0x5   :  { %256 = vmatpush3.bf16.xpose.msk.msra.mxu0 %vm350_vm1, %v254_v6  ;;  %19 = vadd.xlane.f32.xlu0 %v18_v7 }
   0x6   :  { %257 = vmatprep.subr.bf16.mxu0 %v315_v5 }
   0x7   :  { %8 = vsyncpa [#allocation3], 0  ;;  %v258_v10 = vpack.c.bf16 %v27_v9, %v26_v8  ;;  %v28_v11 = vld [vmem:[%s430_s1 + $0x20] sm:$0xff]  ;;  %v29_v12 = vld [vmem:[%s430_s1 + $0x28] sm:$0xff]  ;;  %vm316_vm2 = vmmov 0   ;;  %v317_v16 = vmov 0.0  }
   0x8   :  { %v262_v13 = vpack.c.bf16 %v29_v12, %v28_v11  ;;  %v30_v14 = vld [vmem:[%s430_s1 + $0x30] sm:$0xff]  ;;  %v31_v15 = vld [vmem:[%s430_s1 + $0x38] sm:$0xff]  ;;  %250 = vmatprep.mubr.msk.f32.mxu0 %vm316_vm2, %v317_v16  ;;  %v32_v18 = vld [vmem:[%s430_s1 + $0x40] sm:$0xff]  ;;  %s318_s19 = smov [#allocation2]  }
   0x9   :  { %v266_v17 = vpack.c.bf16 %v31_v15, %v30_v14  ;;  %v33_v19 = vld [vmem:[%s430_s1 + $0x48] sm:$0xff]  ;;  %v34_v21 = vld [vmem:[%s430_s1 + $0x50] sm:$0xff]  ;;  %v35_v22 = vld [vmem:[%s430_s1 + $0x58] sm:$0xff]  ;;  %s175_s20 = sshll.u32 %s318_s19, 4  ;;  %s176_s20 = int_to_ptr.vmem [resolvable:$true] %s175_s20 }
   0xa   :  { %v270_v20 = vpack.c.bf16 %v33_v19, %v32_v18  ;;  %v274_v23 = vpack.c.bf16 %v35_v22, %v34_v21  ;;  %v36_v24 = vld [vmem:[%s430_s1 + $0x60] sm:$0xff]  ;;  %v37_v25 = vld [vmem:[%s430_s1 + $0x68] sm:$0xff]  ;;  %v38_v27 = vld [vmem:[%s430_s1 + $0x70] sm:$0xff]  ;;  %p296_p1 = scmp.lt.s32.totalorder %s176_s20, %s176_s20 }
   0xb   :  { %v278_v26 = vpack.c.bf16 %v37_v25, %v36_v24  ;;  %v39_v28 = vld [vmem:[%s430_s1 + $0x78] sm:$0xff]  ;;  %v183_v34 = vld [vmem:[%s431_s2] ss:$0 sm:$0xff]  ;;  %s291_s1 = scalar_lea.vmem %s176_s20, 128 }
   0xc   :  { %v282_v29 = vpack.c.bf16 %v39_v28, %v38_v27  ;;  %p292_p0 = scmp.ne.s32.totalorder %s176_s20, %s291_s1  ;;  %p297_p2 = scmp.lt.s32.totalorder %s291_s1, %s291_s1 }
   0xd   :  { %260 = vmatpush3.bf16.xpose.msk.msra.mxu0 %vm350_vm1, %v258_v10 }
   0xe   :  { %261 = vmatprep.subr.bf16.mxu0 %v315_v5  ;;  %p298_p3 = por %p297_p2, %p296_p1 }
  0x10   :  { %p299_p4 = pnand %p298_p3, %p292_p0 }
  0x15   :  { %264 = vmatpush3.bf16.xpose.msk.msra.mxu0 %vm350_vm1, %v262_v13 }
  0x16   :  { %265 = vmatprep.subr.bf16.mxu0 %v315_v5 }
  0x1d   :  { %268 = vmatpush3.bf16.xpose.msk.msra.mxu0 %vm350_vm1, %v266_v17 }
  0x1e   :  { %269 = vmatprep.subr.bf16.mxu0 %v315_v5 }
  0x25   :  { %272 = vmatpush3.bf16.xpose.msk.msra.mxu0 %vm350_vm1, %v270_v20 }
  0x26   :  { %273 = vmatprep.subr.bf16.mxu0 %v315_v5 }
  0x2d   :  { %276 = vmatpush3.bf16.xpose.msk.msra.mxu0 %vm350_vm1, %v274_v23 }
  0x2e   :  { %277 = vmatprep.subr.bf16.mxu0 %v315_v5 }
  0x35   :  { %280 = vmatpush3.bf16.xpose.msk.msra.mxu0 %vm350_vm1, %v278_v26 }
  0x36   :  { %281 = vmatprep.subr.bf16.mxu0 %v315_v5 }
  0x3d   :  { %284 = vmatpush3.bf16.xpose.msk.msra.mxu0 %vm350_vm1, %v282_v29 }
  0x92   :  { %v20_v30 = vpop.xlane.xlu0 %19 }
  0x93   :  { %v21_v31 = vmax.f32 %v20_v30, 1e-24 }
  0x95   :  { %289 = vrsqrt.f32 %v21_v31 }
  0x9f   :  { %v290_v32 = vpop.eup %289 }
  0xa0   :  { %v23_v33 = vmul.f32 %v290_v32, %v15_v0 }
  0xa2   :  { %251 = vmatmul.mubr.msk.f32.vlgmr.msra.gmra.mrb[0].mxu0 %vm17_vm0, %v23_v33 }
 0x175   :  { %v164_v35 = vpop.f32.mrb[0].mxu0 }
 0x176   :  { %v165_v36 = vadd.f32 %v183_v34, %v164_v35  ;;  %v252_v37 = vpop.f32.mrb[1].mxu0 }
 0x178   :  { %168 = vst [vmem:[#allocation2] sm:$0xff] %v165_v36 }
 0x179   :  { %302 = shalt.err (!%p299_p4)
}
 0x17a   :  { %s303_s23 = scalar_lea.hbm %s432_s3, 128 }
 0x17b   :  { %p304_p5 = scmp.ne.s32.totalorder %s432_s3, %s303_s23  ;;  %p307_p6 = scmp.lt.u32.totalorder %s303_s23, %s432_s3 }
 0x17d   :  { %p309_p7 = pnand %p307_p6, %p304_p5 }
 0x17f   :  { %312 = shalt.err (!%p309_p7)
}
 0x180   :  { %178 = dma.vmem_to_hbm [thread:$0]  %s176_s20, 128, %s432_s3, [#allocation3]  }
 0x181   :  { %313 = dma.done.wait [#allocation3], 128  }
 0x182   :  { %314 = vsyncadd [#allocation3], 4294967168 }
 0x183   :  { %182 = vsyncpa [#allocation3], 1 }

</bundles_post_ra>
